<compile_context>
chip_gen: v7x
topology: tpu7x:2x2x1
jax: 0.10.0
libtpu: 0.0.40
codegen_flags: <defaults>
</compile_context>

<pallas_src>
import functools

import jax
import jax.numpy as jnp
from jax.experimental import pallas as pl
from jax.experimental.pallas import tpu as pltpu

EPS = 1e-5  # nn.InstanceNorm2d default eps


def _residual_block_kernel(x_ref, w1_ref, b1_ref, w2_ref, b2_ref, o_ref, *, H, W):
    # x_ref: (C, P) with P = H*W -- one sample (batch dim squeezed by BlockSpec).
    del H
    x = x_ref[...].astype(jnp.float32)
    C, P = x.shape

    # Reflection-boundary masks, computed once and reused by both convs.
    p_idx = jax.lax.broadcasted_iota(jnp.int32, (C, P), 1)
    col = p_idx % W
    w_first = col == 0
    w_last = col == (W - 1)
    h_first = p_idx < W
    h_last = p_idx >= (P - W)

    def reflect_taps(a):
        # Build the 9 reflection-padded 3x3 taps of `a` as an im2col matrix
        # (9*C, P), tap-major, using XLU rolls + single-row/column selects.
        up = pltpu.roll(a, shift=W, axis=1)       # a[p - W]  (row above)
        dn = pltpu.roll(a, shift=P - W, axis=1)   # a[p + W]  (row below)
        a_hm = jnp.where(h_first, dn, up)         # dh = -1 (reflect at top)
        a_hp = jnp.where(h_last, up, dn)          # dh = +1 (reflect at bottom)
        taps = []
        for ah in (a_hm, a, a_hp):                # dh = -1, 0, +1
            left = pltpu.roll(ah, shift=1, axis=1)        # ah[p - 1]
            right = pltpu.roll(ah, shift=P - 1, axis=1)   # ah[p + 1]
            taps.append(jnp.where(w_first, right, left))  # dw = -1
            taps.append(ah)                               # dw =  0
            taps.append(jnp.where(w_last, left, right))   # dw = +1
        return jnp.concatenate(taps, axis=0)              # (9*C, P)

    def conv3x3(a, wm, b):
        # wm: (C_out, 9*C_in) tap-major; one fat MXU matmul, bias fused.
        g = reflect_taps(a)
        return jnp.dot(wm, g, preferred_element_type=jnp.float32) + b

    inv_p = 1.0 / float(P)

    def instance_norm(a):
        # Fused single-pass stats per (sample, channel) row over spatial lanes.
        s = jnp.sum(a, axis=1, keepdims=True)
        ss = jnp.sum(a * a, axis=1, keepdims=True)
        mean = s * inv_p
        var = jnp.maximum(ss * inv_p - mean * mean, 0.0)
        return (a - mean) * jax.lax.rsqrt(var + EPS)

    out = conv3x3(x, w1_ref[...], b1_ref[...])
    out = jnp.maximum(instance_norm(out), 0.0)   # ReLU fused into epilogue
    out = conv3x3(out, w2_ref[...], b2_ref[...])
    out = instance_norm(out) + x                 # residual
    o_ref[...] = jnp.maximum(out, 0.0).astype(o_ref.dtype)


def residual_block(x_nchw, w1, b1, w2, b2):
    """ResidualBlock forward.

    x_nchw: (N, C, H, W) float32
    w1, w2: (C, C, 3, 3) float32   (PyTorch Conv2d OIHW layout)
    b1, b2: (C,)         float32
    returns (N, C, H, W) float32
    """
    N, C, H, W = x_nchw.shape
    assert H >= 2 and W >= 2, "ReflectionPad2d(1) requires H, W >= 2"
    P = H * W

    # Free reshape (merges contiguous trailing dims; no transpose / HBM relayout).
    x_flat = x_nchw.reshape(N, C, P)

    # Pack conv weights tap-major: Wm[o, (kh*3 + kw)*C + i] = w[o, i, kh, kw].
    def pack_w(w):
        return jnp.transpose(w, (0, 2, 3, 1)).reshape(C, 9 * C)

    w1m, w2m = pack_w(w1), pack_w(w2)
    b1c, b2c = b1.reshape(C, 1), b2.reshape(C, 1)

    kernel = functools.partial(_residual_block_kernel, H=H, W=W)
    full = lambda shape: pl.BlockSpec(shape, lambda n: (0,) * len(shape))

    out_flat = pl.pallas_call(
        kernel,
        out_shape=jax.ShapeDtypeStruct((N, C, P), jnp.float32),
        grid_spec=pltpu.PrefetchScalarGridSpec(
            num_scalar_prefetch=0,
            grid=(N,),
            in_specs=[
                pl.BlockSpec((None, C, P), lambda n: (n, 0, 0)),  # x (batch squeezed)
                full((C, 9 * C)),                                 # conv1 weight (im2col)
                full((C, 1)),                                     # conv1 bias
                full((C, 9 * C)),                                 # conv2 weight (im2col)
                full((C, 1)),                                     # conv2 bias
            ],
            out_specs=pl.BlockSpec((None, C, P), lambda n: (n, 0, 0)),
        ),
        compiler_params=pltpu.CompilerParams(
            dimension_semantics=("parallel",),  # batch axis -> megacore on v7x
        ),
    )(x_flat, w1m, b1c, w2m, b2c)

    return out_flat.reshape(N, C, H, W)


def _reference(x_nchw, w1, b1, w2, b2):
    # Pure-JAX reference mirroring the PyTorch module (NCHW, OIHW weights).
    def conv(x, w, b):
        xp = jnp.pad(x, ((0, 0), (0, 0), (1, 1), (1, 1)), mode="reflect")
        y = jax.lax.conv_general_dilated(
            xp, w, (1, 1), "VALID",
            dimension_numbers=("NCHW", "OIHW", "NCHW"),
            precision=jax.lax.Precision.HIGHEST)
        return y + b.reshape(1, -1, 1, 1)

    def inorm(x):
        m = x.mean(axis=(2, 3), keepdims=True)
        v = ((x - m) ** 2).mean(axis=(2, 3), keepdims=True)
        return (x - m) / jnp.sqrt(v + EPS)

    out = jax.nn.relu(inorm(conv(x_nchw, w1, b1)))
    out = inorm(conv(out, w2, b2))
    return jax.nn.relu(out + x_nchw)


if __name__ == "__main__":
    N, C, H, W = 2, 4, 16, 16

    key = jax.random.PRNGKey(0)
    kx, kw1, kb1, kw2, kb2 = jax.random.split(key, 5)

    x = jax.random.normal(kx, (N, C, H, W), jnp.float32)
    # Synthetic params in PyTorch Conv2d(C, C, 3, 1) layout.
    w1 = jax.random.normal(kw1, (C, C, 3, 3), jnp.float32) * 0.2
    b1 = jax.random.normal(kb1, (C,), jnp.float32) * 0.1
    w2 = jax.random.normal(kw2, (C, C, 3, 3), jnp.float32) * 0.2
    b2 = jax.random.normal(kb2, (C,), jnp.float32) * 0.1

    out = residual_block(x, w1, b1, w2, b2)
    jax.block_until_ready(out)

    ref = _reference(x, w1, b1, w2, b2)
    assert out.shape == (N, C, H, W)
    assert jnp.allclose(out, ref, atol=5e-3, rtol=5e-3)

    print("KERNEL_OK")
</pallas_src>

<mosaic_0001>
module attributes {stable_mosaic.version = 11 : i64} {
  func.func @_residual_block_kernel(%arg0: i32, %arg1: memref<1x4x256xf32, #tpu.memory_space<vmem>>, %arg2: memref<4x36xf32, #tpu.memory_space<vmem>>, %arg3: memref<4x1xf32, #tpu.memory_space<vmem>>, %arg4: memref<4x36xf32, #tpu.memory_space<vmem>>, %arg5: memref<4x1xf32, #tpu.memory_space<vmem>>, %arg6: memref<1x4x256xf32, #tpu.memory_space<vmem>>) attributes {dimension_semantics = [#tpu.dimension_semantics<parallel>], iteration_bounds = array<i64: 2>, scalar_prefetch = 0 : i64, scratch_operands = 0 : i64, tpu.core_type = #tpu.core_type<tc>, window_params = [{transform_indices = @transform_0, window_bounds = array<i64: 1, 4, 256>}, {pipeline_mode = #tpu.pipeline_mode<synchronous>, transform_indices = @transform_1, window_bounds = array<i64: 4, 36>}, {pipeline_mode = #tpu.pipeline_mode<synchronous>, transform_indices = @transform_2, window_bounds = array<i64: 4, 1>}, {pipeline_mode = #tpu.pipeline_mode<synchronous>, transform_indices = @transform_3, window_bounds = array<i64: 4, 36>}, {pipeline_mode = #tpu.pipeline_mode<synchronous>, transform_indices = @transform_4, window_bounds = array<i64: 4, 1>}, {transform_indices = @transform_5, window_bounds = array<i64: 1, 4, 256>}]} {
    %c0 = arith.constant 0 : index
    %c0_0 = arith.constant 0 : index
    %c0_1 = arith.constant 0 : index
    %0 = vector.load %arg1[%c0, %c0_0, %c0_1] : memref<1x4x256xf32, #tpu.memory_space<vmem>>, vector<1x4x256xf32>
    %1 = vector.shape_cast %0 : vector<1x4x256xf32> to vector<4x256xf32>
    %2 = tpu.iota {dimensions = array<i32: 1>} : vector<4x256xi32>
    %c16_i32 = arith.constant 16 : i32
    %c0_i32 = arith.constant 0 : i32
    %3 = arith.cmpi eq, %c16_i32, %c0_i32 : i32
    %c1_i32 = arith.constant 1 : i32
    %4 = arith.select %3, %c1_i32, %c16_i32 : i32
    %5 = vector.broadcast %4 : i32 to vector<4x256xi32>
    %6 = arith.remsi %2, %5 : vector<4x256xi32>
    %c0_i32_2 = arith.constant 0 : i32
    %7 = vector.broadcast %c0_i32_2 : i32 to vector<4x256xi32>
    %8 = arith.cmpi ne, %6, %7 : vector<4x256xi32>
    %c0_i32_3 = arith.constant 0 : i32
    %9 = vector.broadcast %c0_i32_3 : i32 to vector<4x256xi32>
    %10 = arith.cmpi slt, %6, %9 : vector<4x256xi32>
    %c0_i32_4 = arith.constant 0 : i32
    %11 = arith.cmpi slt, %4, %c0_i32_4 : i32
    %12 = vector.broadcast %11 : i1 to vector<4x256xi1>
    %13 = vector.broadcast %12 : vector<4x256xi1> to vector<4x256xi1>
    %14 = arith.xori %10, %13 : vector<4x256xi1>
    %15 = arith.andi %14, %8 : vector<4x256xi1>
    %16 = vector.broadcast %4 : i32 to vector<4x256xi32>
    %17 = arith.addi %6, %16 : vector<4x256xi32>
    %18 = arith.select %15, %17, %6 : vector<4x256xi1>, vector<4x256xi32>
    %c0_i32_5 = arith.constant 0 : i32
    %19 = vector.broadcast %c0_i32_5 : i32 to vector<4x256xi32>
    %20 = arith.cmpi eq, %18, %19 : vector<4x256xi32>
    %c15_i32 = arith.constant 15 : i32
    %21 = vector.broadcast %c15_i32 : i32 to vector<4x256xi32>
    %22 = arith.cmpi eq, %18, %21 : vector<4x256xi32>
    %c16_i32_6 = arith.constant 16 : i32
    %23 = vector.broadcast %c16_i32_6 : i32 to vector<4x256xi32>
    %24 = arith.cmpi slt, %2, %23 : vector<4x256xi32>
    %c240_i32 = arith.constant 240 : i32
    %25 = vector.broadcast %c240_i32 : i32 to vector<4x256xi32>
    %26 = arith.cmpi sge, %2, %25 : vector<4x256xi32>
    %c0_7 = arith.constant 0 : index
    %c0_8 = arith.constant 0 : index
    %27 = vector.load %arg2[%c0_7, %c0_8] : memref<4x36xf32, #tpu.memory_space<vmem>>, vector<4x36xf32>
    %c0_9 = arith.constant 0 : index
    %c0_10 = arith.constant 0 : index
    %28 = vector.load %arg3[%c0_9, %c0_10] : memref<4x1xf32, #tpu.memory_space<vmem>>, vector<4x1xf32>
    %c16_i32_11 = arith.constant 16 : i32
    %29 = tpu.dynamic_rotate %1 by %c16_i32_11 dim 1 : vector<4x256xf32>, i32 -> vector<4x256xf32>
    %c240_i32_12 = arith.constant 240 : i32
    %30 = tpu.dynamic_rotate %1 by %c240_i32_12 dim 1 : vector<4x256xf32>, i32 -> vector<4x256xf32>
    %31 = arith.select %24, %30, %29 : vector<4x256xi1>, vector<4x256xf32>
    %32 = arith.select %26, %29, %30 : vector<4x256xi1>, vector<4x256xf32>
    %c1_i32_13 = arith.constant 1 : i32
    %33 = tpu.dynamic_rotate %31 by %c1_i32_13 dim 1 : vector<4x256xf32>, i32 -> vector<4x256xf32>
    %c255_i32 = arith.constant 255 : i32
    %34 = tpu.dynamic_rotate %31 by %c255_i32 dim 1 : vector<4x256xf32>, i32 -> vector<4x256xf32>
    %35 = arith.select %20, %34, %33 : vector<4x256xi1>, vector<4x256xf32>
    %36 = arith.select %22, %33, %34 : vector<4x256xi1>, vector<4x256xf32>
    %c1_i32_14 = arith.constant 1 : i32
    %37 = tpu.dynamic_rotate %1 by %c1_i32_14 dim 1 : vector<4x256xf32>, i32 -> vector<4x256xf32>
    %c255_i32_15 = arith.constant 255 : i32
    %38 = tpu.dynamic_rotate %1 by %c255_i32_15 dim 1 : vector<4x256xf32>, i32 -> vector<4x256xf32>
    %39 = arith.select %20, %38, %37 : vector<4x256xi1>, vector<4x256xf32>
    %40 = arith.select %22, %37, %38 : vector<4x256xi1>, vector<4x256xf32>
    %c1_i32_16 = arith.constant 1 : i32
    %41 = tpu.dynamic_rotate %32 by %c1_i32_16 dim 1 : vector<4x256xf32>, i32 -> vector<4x256xf32>
    %c255_i32_17 = arith.constant 255 : i32
    %42 = tpu.dynamic_rotate %32 by %c255_i32_17 dim 1 : vector<4x256xf32>, i32 -> vector<4x256xf32>
    %43 = arith.select %20, %42, %41 : vector<4x256xi1>, vector<4x256xf32>
    %44 = arith.select %22, %41, %42 : vector<4x256xi1>, vector<4x256xf32>
    %45 = tpu.concatenate %35, %31, %36, %39, %1, %40, %43, %32, %44 in 0 : vector<4x256xf32>, vector<4x256xf32>, vector<4x256xf32>, vector<4x256xf32>, vector<4x256xf32>, vector<4x256xf32>, vector<4x256xf32>, vector<4x256xf32>, vector<4x256xf32> -> vector<36x256xf32>
    %cst = arith.constant dense<0.000000e+00> : vector<4x256xf32>
    %46 = tpu.matmul %27, %45, %cst {dimension_numbers = #tpu.dot_dimension_numbers<[1], [0], [0], [1], [0, 0, 1, 1], [], []>} : vector<4x36xf32>, vector<36x256xf32>, vector<4x256xf32> -> vector<4x256xf32>
    %47 = vector.broadcast %28 : vector<4x1xf32> to vector<4x256xf32>
    %48 = arith.addf %46, %47 : vector<4x256xf32>
    %cst_18 = arith.constant dense<0.000000e+00> : vector<4xf32>
    %49 = vector.multi_reduction <add>, %48, %cst_18 [1] : vector<4x256xf32> to vector<4xf32>
    %50 = vector.shape_cast %49 : vector<4xf32> to vector<4x1xf32>
    %51 = arith.mulf %48, %48 : vector<4x256xf32>
    %cst_19 = arith.constant dense<0.000000e+00> : vector<4xf32>
    %52 = vector.multi_reduction <add>, %51, %cst_19 [1] : vector<4x256xf32> to vector<4xf32>
    %53 = vector.shape_cast %52 : vector<4xf32> to vector<4x1xf32>
    %cst_20 = arith.constant 3.906250e-03 : f32
    %54 = vector.broadcast %cst_20 : f32 to vector<4x1xf32>
    %55 = arith.mulf %50, %54 : vector<4x1xf32>
    %cst_21 = arith.constant 3.906250e-03 : f32
    %56 = vector.broadcast %cst_21 : f32 to vector<4x1xf32>
    %57 = arith.mulf %53, %56 : vector<4x1xf32>
    %58 = arith.mulf %55, %55 : vector<4x1xf32>
    %59 = arith.subf %57, %58 : vector<4x1xf32>
    %cst_22 = arith.constant 0.000000e+00 : f32
    %60 = vector.broadcast %cst_22 : f32 to vector<4x1xf32>
    %61 = arith.maximumf %59, %60 : vector<4x1xf32>
    %62 = vector.broadcast %55 : vector<4x1xf32> to vector<4x256xf32>
    %63 = arith.subf %48, %62 : vector<4x256xf32>
    %cst_23 = arith.constant 9.99999974E-6 : f32
    %64 = vector.broadcast %cst_23 : f32 to vector<4x1xf32>
    %65 = arith.addf %61, %64 : vector<4x1xf32>
    %66 = math.rsqrt %65 : vector<4x1xf32>
    %67 = vector.broadcast %66 : vector<4x1xf32> to vector<4x256xf32>
    %68 = arith.mulf %63, %67 : vector<4x256xf32>
    %cst_24 = arith.constant 0.000000e+00 : f32
    %69 = vector.broadcast %cst_24 : f32 to vector<4x256xf32>
    %70 = arith.maximumf %68, %69 : vector<4x256xf32>
    %c0_25 = arith.constant 0 : index
    %c0_26 = arith.constant 0 : index
    %71 = vector.load %arg4[%c0_25, %c0_26] : memref<4x36xf32, #tpu.memory_space<vmem>>, vector<4x36xf32>
    %c0_27 = arith.constant 0 : index
    %c0_28 = arith.constant 0 : index
    %72 = vector.load %arg5[%c0_27, %c0_28] : memref<4x1xf32, #tpu.memory_space<vmem>>, vector<4x1xf32>
    %c16_i32_29 = arith.constant 16 : i32
    %73 = tpu.dynamic_rotate %70 by %c16_i32_29 dim 1 : vector<4x256xf32>, i32 -> vector<4x256xf32>
    %c240_i32_30 = arith.constant 240 : i32
    %74 = tpu.dynamic_rotate %70 by %c240_i32_30 dim 1 : vector<4x256xf32>, i32 -> vector<4x256xf32>
    %75 = arith.select %24, %74, %73 : vector<4x256xi1>, vector<4x256xf32>
    %76 = arith.select %26, %73, %74 : vector<4x256xi1>, vector<4x256xf32>
    %c1_i32_31 = arith.constant 1 : i32
    %77 = tpu.dynamic_rotate %75 by %c1_i32_31 dim 1 : vector<4x256xf32>, i32 -> vector<4x256xf32>
    %c255_i32_32 = arith.constant 255 : i32
    %78 = tpu.dynamic_rotate %75 by %c255_i32_32 dim 1 : vector<4x256xf32>, i32 -> vector<4x256xf32>
    %79 = arith.select %20, %78, %77 : vector<4x256xi1>, vector<4x256xf32>
    %80 = arith.select %22, %77, %78 : vector<4x256xi1>, vector<4x256xf32>
    %c1_i32_33 = arith.constant 1 : i32
    %81 = tpu.dynamic_rotate %70 by %c1_i32_33 dim 1 : vector<4x256xf32>, i32 -> vector<4x256xf32>
    %c255_i32_34 = arith.constant 255 : i32
    %82 = tpu.dynamic_rotate %70 by %c255_i32_34 dim 1 : vector<4x256xf32>, i32 -> vector<4x256xf32>
    %83 = arith.select %20, %82, %81 : vector<4x256xi1>, vector<4x256xf32>
    %84 = arith.select %22, %81, %82 : vector<4x256xi1>, vector<4x256xf32>
    %c1_i32_35 = arith.constant 1 : i32
    %85 = tpu.dynamic_rotate %76 by %c1_i32_35 dim 1 : vector<4x256xf32>, i32 -> vector<4x256xf32>
    %c255_i32_36 = arith.constant 255 : i32
    %86 = tpu.dynamic_rotate %76 by %c255_i32_36 dim 1 : vector<4x256xf32>, i32 -> vector<4x256xf32>
    %87 = arith.select %20, %86, %85 : vector<4x256xi1>, vector<4x256xf32>
    %88 = arith.select %22, %85, %86 : vector<4x256xi1>, vector<4x256xf32>
    %89 = tpu.concatenate %79, %75, %80, %83, %70, %84, %87, %76, %88 in 0 : vector<4x256xf32>, vector<4x256xf32>, vector<4x256xf32>, vector<4x256xf32>, vector<4x256xf32>, vector<4x256xf32>, vector<4x256xf32>, vector<4x256xf32>, vector<4x256xf32> -> vector<36x256xf32>
    %cst_37 = arith.constant dense<0.000000e+00> : vector<4x256xf32>
    %90 = tpu.matmul %71, %89, %cst_37 {dimension_numbers = #tpu.dot_dimension_numbers<[1], [0], [0], [1], [0, 0, 1, 1], [], []>} : vector<4x36xf32>, vector<36x256xf32>, vector<4x256xf32> -> vector<4x256xf32>
    %91 = vector.broadcast %72 : vector<4x1xf32> to vector<4x256xf32>
    %92 = arith.addf %90, %91 : vector<4x256xf32>
    %cst_38 = arith.constant dense<0.000000e+00> : vector<4xf32>
    %93 = vector.multi_reduction <add>, %92, %cst_38 [1] : vector<4x256xf32> to vector<4xf32>
    %94 = vector.shape_cast %93 : vector<4xf32> to vector<4x1xf32>
    %95 = arith.mulf %92, %92 : vector<4x256xf32>
    %cst_39 = arith.constant dense<0.000000e+00> : vector<4xf32>
    %96 = vector.multi_reduction <add>, %95, %cst_39 [1] : vector<4x256xf32> to vector<4xf32>
    %97 = vector.shape_cast %96 : vector<4xf32> to vector<4x1xf32>
    %cst_40 = arith.constant 3.906250e-03 : f32
    %98 = vector.broadcast %cst_40 : f32 to vector<4x1xf32>
    %99 = arith.mulf %94, %98 : vector<4x1xf32>
    %cst_41 = arith.constant 3.906250e-03 : f32
    %100 = vector.broadcast %cst_41 : f32 to vector<4x1xf32>
    %101 = arith.mulf %97, %100 : vector<4x1xf32>
    %102 = arith.mulf %99, %99 : vector<4x1xf32>
    %103 = arith.subf %101, %102 : vector<4x1xf32>
    %cst_42 = arith.constant 0.000000e+00 : f32
    %104 = vector.broadcast %cst_42 : f32 to vector<4x1xf32>
    %105 = arith.maximumf %103, %104 : vector<4x1xf32>
    %106 = vector.broadcast %99 : vector<4x1xf32> to vector<4x256xf32>
    %107 = arith.subf %92, %106 : vector<4x256xf32>
    %cst_43 = arith.constant 9.99999974E-6 : f32
    %108 = vector.broadcast %cst_43 : f32 to vector<4x1xf32>
    %109 = arith.addf %105, %108 : vector<4x1xf32>
    %110 = math.rsqrt %109 : vector<4x1xf32>
    %111 = vector.broadcast %110 : vector<4x1xf32> to vector<4x256xf32>
    %112 = arith.mulf %107, %111 : vector<4x256xf32>
    %113 = arith.addf %112, %1 : vector<4x256xf32>
    %cst_44 = arith.constant 0.000000e+00 : f32
    %114 = vector.broadcast %cst_44 : f32 to vector<4x256xf32>
    %115 = arith.maximumf %113, %114 : vector<4x256xf32>
    %c0_45 = arith.constant 0 : index
    %c0_46 = arith.constant 0 : index
    %c0_47 = arith.constant 0 : index
    %116 = vector.load %arg6[%c0_45, %c0_46, %c0_47] : memref<1x4x256xf32, #tpu.memory_space<vmem>>, vector<1x4x256xf32>
    %117 = vector.shape_cast %116 : vector<1x4x256xf32> to vector<4x256xf32>
    %118 = vector.shape_cast %115 : vector<4x256xf32> to vector<1x4x256xf32>
    tpu.vector_store %arg6[%c0_45, %c0_46, %c0_47], %118 {strides = array<i32>} : memref<1x4x256xf32, #tpu.memory_space<vmem>>, vector<1x4x256xf32>,
    return
  }
  func.func @transform_0(%arg0: i32) -> (i32, i32, i32) {
    %c0_i32 = arith.constant 0 : i32
    %c0_i32_0 = arith.constant 0 : i32
    %c0_i32_1 = arith.constant 0 : i32
    return %arg0, %c0_i32, %c0_i32_0 : i32, i32, i32
  }
  func.func @transform_1(%arg0: i32) -> (i32, i32) {
    %c0_i32 = arith.constant 0 : i32
    %c0_i32_0 = arith.constant 0 : i32
    %c0_i32_1 = arith.constant 0 : i32
    return %c0_i32, %c0_i32_0 : i32, i32
  }
  func.func @transform_2(%arg0: i32) -> (i32, i32) {
    %c0_i32 = arith.constant 0 : i32
    %c0_i32_0 = arith.constant 0 : i32
    %c0_i32_1 = arith.constant 0 : i32
    return %c0_i32, %c0_i32_0 : i32, i32
  }
  func.func @transform_3(%arg0: i32) -> (i32, i32) {
    %c0_i32 = arith.constant 0 : i32
    %c0_i32_0 = arith.constant 0 : i32
    %c0_i32_1 = arith.constant 0 : i32
    return %c0_i32, %c0_i32_0 : i32, i32
  }
  func.func @transform_4(%arg0: i32) -> (i32, i32) {
    %c0_i32 = arith.constant 0 : i32
    %c0_i32_0 = arith.constant 0 : i32
    %c0_i32_1 = arith.constant 0 : i32
    return %c0_i32, %c0_i32_0 : i32, i32
  }
  func.func @transform_5(%arg0: i32) -> (i32, i32, i32) {
    %c0_i32 = arith.constant 0 : i32
    %c0_i32_0 = arith.constant 0 : i32
    %c0_i32_1 = arith.constant 0 : i32
    return %arg0, %c0_i32, %c0_i32_0 : i32, i32, i32
  }
}

</mosaic_0001>

<bundles_post_ra>
// kernel: tpu_custom_call.1
= control target key start
LH: loop header
LB: loop body
LE: loop exit
PB: predicated region body
PF: predicated region fallthrough
CT: control target
= control target key end

     0   :  { %10 = vsyncpa [#allocation3], 0  ;;  %s1503_s0 = inlined_call_operand.hbm [shape: f32[2,4,256], index: 0, kind: input, shape index: {}]   ;;  %s1504_s1 = inlined_call_operand.vmem [shape: f32[4,36], index: 1, kind: input, shape index: {}]   ;;  %s1505_s2 = inlined_call_operand.vmem [shape: f32[4,1], index: 2, kind: input, shape index: {}]   ;;  %s1506_s3 = inlined_call_operand.vmem [shape: f32[4,36], index: 3, kind: input, shape index: {}]   ;;  %s1507_s4 = inlined_call_operand.vmem [shape: f32[4,1], index: 4, kind: input, shape index: {}]   ;;  %s1508_s5 = inlined_call_operand.hbm [shape: f32[2,4,256], index: 5, kind: output, shape index: {}]  }
   0x1   :  { %12 = vsyncpa [#allocation3 + $0x1], 0 }
   0x2   :  { %13 = vsyncpa [#allocation4], 0 }
   0x3   :  { %15 = vsyncpa [#allocation4 + $0x1], 0  ;;  %s1065_s18 = smov 0   ;;  %s1067_s19 = smov 0  }
   0x4   :  { %s1069_s20 = smov 0   ;;  %s1071_s21 = smov 0  }
   0x5 LB: > { %s1086_s22 = sadd.s32 4294967295, %s1025_s21   ;;  %s793_s23 = sadd.s32 4294967294, %s1025_s21   ;;  %s1025_s21 = sphi %s1071_s21, %s1531_s21   ;;  %s1021_s20 = sphi %s1069_s20, %s1530_s20   ;;  %s1017_s19 = sphi %s1067_s19, %s1529_s19   ;;  %s1013_s18 = sphi %s1065_s18, %s1528_s18  }
   0x6   : > { %s1090_s24 = sadd.s32 1, %s1025_s21   ;;  %s28_s25 = sadd.s32 1, %s1021_s20 }
   0x7   : > { %s25_s26 = ssub.s32 %s1025_s21, %s1090_s24  ;;  %p35_p0 = scmp.ne.s32.totalorder %s1021_s20, %s1017_s19 }
   0x8   : > { %p26_p1 = scmp.eq.s32.totalorder %s25_s26, 0  ;;  %p36_p2 = scmp.eq.s32.totalorder %s1025_s21, 0 }
   0x9   : > { %p41_p3 = scmp.ne.s32.totalorder %s1017_s19, %s1013_s18  ;;  %p42_p4 = scmp.eq.s32.totalorder %s1086_s22, 0 }
   0xa   : > { %s1102_s27 = scalar_select %p26_p1, %s1021_s20, %s28_s25  }
   0xb   : > { %p1104_p5 = por %p36_p2, %p35_p0  ;;  %p1108_p6 = por %p42_p4, %p41_p3 }
   0xc   : > { %p149_p7 = scmp.eq.s32.totalorder %s1086_s22, 1  ;;  %p155_p8 = scmp.eq.s32.totalorder %s793_s23, 1 }
   0xd   : > { %p843_p10 = scmp.lt.s32.totalorder %s1025_s21, 2  ;;  %s187_s7 = sand.u32 1, %s1021_s20  }
   0xe   : > { %p1115_p11 = por %p149_p7, %p35_p0  ;;  %p1119_p12 = por %p155_p8, %p41_p3 }
   0xf   : > { %s813_s8 = sshll.u32 %s1025_s21, 7  ;;  %s796_s9 = sshll.u32 %s187_s7, 3 }
  0x10   : > { %s1512_s30 = scalar_select %p1115_p11, 1, 0 }
  0x11   : > { %s1513_s6 = scalar_select %p1119_p12, 1, 0 }
  0x12   : > { %s1128_s12 = scalar_lea.hbm %s1503_s0, %s813_s8  ;;  %s191_s13 = scalar_lea.vmem [#allocation2], %s796_s9 }
  0x13   : > { %s199_s14 = sshll.u32 %s191_s13, 4  ;;  %p1132_p13 = pnand %p843_p10, %p1104_p5  ;;  %s1136_s14 = int_to_ptr.vmem [resolvable:$true] %s199_s14 }
  0x14   : > { %s188_s16 = scalar_lea.sflag [#allocation3], %s187_s7  ;;  %s929_s17 = scalar_lea.hbm %s1128_s12, 128 }
  0x15   : > { %p930_p2 = scmp.ne.s32.totalorder %s1128_s12, %s929_s17  ;;  %p931_p3 = pneg %p1132_p13 }
  0x16   : > { %s934_s26 = scalar_lea.hbm %s1503_s0, 256  ;;  %p935_p5 = scmp.lt.u32.totalorder %s1128_s12, %s1503_s0 }
  0x17   : > { %p932_p4 = pnand %p931_p3, %p930_p2  ;;  %p936_p8 = scmp.lt.u32.totalorder %s934_s26, %s929_s17 }
  0x18   : > { %p938_p9 = scmp.lt.u32.totalorder %s929_s17, %s1128_s12 }
  0x19   : > { %p933_p7 = pneg %p932_p4  ;;  %p937_p10 = por %p936_p8, %p935_p5 }
  0x1b   : > { %p939_p0 = por %p938_p9, %p937_p10 }
  0x1d   : > { %p940_p1 = pnand %p939_p0, %p933_p7 }
  0x1f   : > { %943 = shalt.err (!%p940_p1)
}
  0x20   : > { %s944_s7 = scalar_lea.vmem %s1136_s14, 128  ;;  %s1027_s9 = smov [#allocation2]  }
  0x21   : > { %p945_p2 = scmp.ne.s32.totalorder %s1136_s14, %s944_s7  ;;  %s949_s10 = sshll.u32 %s1027_s9, 4  ;;  %s950_s10 = int_to_ptr.vmem [resolvable:$false] %s949_s10 }
  0x22   : > { %s951_s11 = scalar_lea.vmem %s950_s10, 256  ;;  %p952_p11 = scmp.lt.s32.totalorder %s1136_s14, %s950_s10 }
  0x23   : > { %p947_p4 = pnand %p945_p2, %p931_p3  ;;  %p953_p5 = scmp.lt.s32.totalorder %s951_s11, %s944_s7 }
  0x25   : > { %p948_p12 = pneg %p947_p4  ;;  %p954_p8 = por %p953_p5, %p952_p11 }
  0x27   : > { %p955_p9 = pnand %p954_p8, %p948_p12 }
  0x29   : > { %958 = shalt.err (!%p955_p9)
}
  0x2a   : > { %838 = dma.hbm_to_vmem [thread:$0]  (!%p1132_p13), %s1128_s12, 128, %s1136_s14, %s188_s16  }
  0x2b   : > { %p1515_p0 = scmp.lt.s32.totalorder %s1025_s21, 3  ;;  %p1516_p1 = scmp.ge.s32.totalorder %s1025_s21, 1 }
  0x2d   : > { %p205_p3 = pnand %p1516_p1, %p1515_p0 }
  0x2e   : > { %s1170_s13 = sand.u32 (!%p205_p3), 1, %s1017_s19  }
  0x2f   : > { %208 = sbr.rel (%p205_p3) target bundleno = 1362 (0x552), region = 40  ;;  %s800_s17 = sshll.u32 (!%p205_p3), %s1170_s13, 3 }
  0x30   : > { %s211_s23 = scalar_lea.sflag (!%p205_p3), [#allocation3], %s1170_s13  ;;  %s214_s15 = scalar_lea.vmem (!%p205_p3), [#allocation2], %s800_s17 }
  0x36   : > { %1004 = dma.done.wait (%p1108_p6), %s211_s23, 128  }
  0x37   : > { %1006 = vsyncadd (%p1108_p6), %s211_s23, 4294967168  ;;  %v1180_v0 = vld [vmem:[%s214_s15] sm:$0xff]  ;;  %s1028_s12 = smov 112   ;;  %s1029_s14 = smov 16   ;;  %v242_v3 = vlaneseq  ;;  %v1032_v17 = vmov 0.0   ;;  %v1033_v19 = vmov 0  }
  0x38   : > { %288 = vrot.lane.b32.xlu1 %v1180_v0, %s1028_s12  ;;  %282 = vrot.lane.b32.xlu0 %v1180_v0, %s1029_s14  ;;  %v1188_v1 = vcombine.high %v1180_v0, %v1180_v0  ;;  %s1030_s29 = smov 1   ;;  %s1031_s16 = smov 127   ;;  %v278_v18 = vld [vmem:[%s1505_s2] sm:$0xf]  ;;  %vm373_vm9 = vcmask 1043456   ;;  %vm387_vm10 = vcmask 293888  }
  0x39   : > { %v1198_v4 = vand.u32 127, %v242_v3  ;;  %461 = vmatprep.mubr.f32.mxu0 %v1032_v17  ;;  %669 = vmatprep.mubr.f32.mxu1 %v1032_v17  ;;  %v493_v29 = vld [vmem:[%s1506_s3] sm:$0xf]  ;;  %s814_s23 = sshll.u32 %s1086_s22, 7  ;;  %s240_s15 = scalar_lea.vmem [#allocation5], %s800_s17 }
  0x3a   : > { %v883_v2 = vpack.i.bf16 %v1188_v1, %v1180_v0  ;;  %903 = vset.pattern.permute.xlu0 %v1033_v19  ;;  %s709_s25 = scalar_lea.sflag [#allocation4], %s1170_s13  ;;  %p1525_p11 = scmp.ne.s32.totalorder %s1512_s30, 0 }
  0x3b   : > { %vm292_vm0 = vcmp.lt.s32.totalorder %v1198_v4, 112  ;;  %vm273_vm1 = vcmp.lt.s32.totalorder %v1198_v4, 16  ;;  %v1213_v12 = vadd.s32 128, %v1198_v4  ;;  %vm303_vm3 = vcmp.lt.s32.totalorder %v1198_v4, 1  ;;  %s1034_s22 = smov [#allocation5]  }
  0x3c   : > { %290 = vrot.lane.b32.xlu1 %v1188_v1, %s1028_s12  ;;  %284 = vrot.lane.b32.xlu0 %v1188_v1, %s1029_s14  ;;  %vm310_vm4 = vcmp.lt.s32.totalorder %v1198_v4, 127  ;;  %v249_v27 = vand.u32 15, %v1198_v4  ;;  %s963_s17 = sshll.u32 %s1034_s22, 4  ;;  %s964_s17 = int_to_ptr.vmem [resolvable:$false] %s963_s17 }
  0x3d   : > { %vm276_vm2 = vcmp.ge.s32.totalorder %v1213_v12, 240  ;;  %v256_v22 = vand.u32 15, %v1213_v12  ;;  %s965_s28 = scalar_lea.vmem %s964_s17, 256 }
  0x3e   : > { %vm1257_vm6 = vcmp.eq.s32.totalorder %v249_v27, 15  ;;  %vm1263_vm7 = vcmp.eq.s32.totalorder %v249_v27, 0 }
  0x3f   : > { %vm1247_vm5 = vcmp.eq.s32.totalorder %v256_v22, 0  ;;  %vm1267_vm8 = vcmp.eq.s32.totalorder %v256_v22, 15 }
  0x40   : > { %884 = vrot.lane.b32.xlu0 %v883_v2, %s1030_s29  ;;  %889 = vrot.lane.b32.xlu1 %v883_v2, %s1031_s16 }
  0xaa   : > { %v289_v5 = vpop.permute.xlu1 %288  ;;  %v283_v6 = vpop.permute.xlu0 %282 }
  0xae   : > { %v291_v7 = vpop.permute.xlu1 %290  ;;  %v285_v8 = vpop.permute.xlu0 %284 }
  0xaf   : > { %v1204_v9 = vsel %vm292_vm0, %v289_v5, %v291_v7  ;;  %v1208_v10 = vsel %vm273_vm1, %v283_v6, %v285_v8  ;;  %v287_v11 = vsel %vm273_vm1, %v285_v8, %v283_v6  ;;  %v294_v15 = vsel %vm292_vm0, %v291_v7, %v289_v5 }
  0xb0   : > { %v1218_v13 = vsel %vm273_vm1, %v1204_v9, %v287_v11  ;;  %333 = vrot.lane.b32.xlu0 %v1204_v9, %s1030_s29  ;;  %v1232_v16 = vsel %vm276_vm2, %v1208_v10, %v294_v15  ;;  %v352_v49 = vrot.slane %v1208_v10, 4  ;;  %v369_v6 = vrot.slane %v1204_v9, 4 }
  0xb1   : > { %v898_v14 = vpack.i.bf16 %v1208_v10, %v1218_v13  ;;  %v351_v46 = vrot.slane %v1218_v13, 4  ;;  %v370_v7 = vrot.slane %v1232_v16, 4 }
  0xb2   : > { %v885_v20 = vpop.permute.xlu0 %884  ;;  %v890_v21 = vpop.permute.xlu1 %889 }
  0xb3   : > { %899 = vrot.lane.b32.xlu1 %v898_v14, %s1031_s16  ;;  %v887_v23 = vunpack.i.h.bf16 %v885_v20  ;;  %v886_v24 = vunpack.i.l.bf16 %v885_v20  ;;  %v892_v25 = vunpack.i.h.bf16 %v890_v21  ;;  %v891_v26 = vunpack.i.l.bf16 %v890_v21 }
  0xb4   : > { %894 = vrot.lane.b32.xlu0 %v898_v14, %s1030_s29 }
  0xb5   : > { %v321_v30 = vsel %vm303_vm3, %v886_v24, %v887_v23  ;;  %v328_v31 = vsel %vm310_vm4, %v892_v25, %v891_v26  ;;  %v322_v32 = vsel %vm303_vm3, %v887_v23, %v886_v24  ;;  %v327_v34 = vsel %vm310_vm4, %v891_v26, %v892_v25  ;;  %v277_v25 = vld [vmem:[%s1504_s1] sm:$0xf] }
  0xb6   : > { %v330_v41 = vsel %vm1247_vm5, %v328_v31, %v321_v30  ;;  %v331_v42 = vsel %vm1257_vm6, %v322_v32, %v327_v34  ;;  %v329_v45 = vsel %vm1263_vm7, %v327_v34, %v322_v32  ;;  %v332_v50 = vsel %vm1267_vm8, %v321_v30, %v328_v31 }
  0xb7   : > { %335 = vrot.lane.b32.xlu1 %v1232_v16, %s1030_s29  ;;  %v358_v54 = vrot.slane %v330_v41, 4  ;;  %v363_v55 = vrot.slane %v331_v42, 4  ;;  %v357_v58 = vrot.slane %v329_v45, 4  ;;  %v364_v63 = vrot.slane %v332_v50, 4 }
  0xb8   : > { %339 = vrot.lane.b32.xlu0 %v1204_v9, %s1031_s16 }
  0xb9   : > { %v378_v20 = vsel %vm373_vm9, %v1180_v0, %v363_v55 }
  0xbb   : > { %341 = vrot.lane.b32.xlu1 %v1232_v16, %s1031_s16 }
  0xbc   : > { %384 = vperm.xlu0 %903, %v278_v18   ;;  %v379_v18 = vsel %vm373_vm9, %v1188_v1, %v364_v63 }
 0x122   : > { %v334_v28 = vpop.permute.xlu0 %333 }
 0x125   : > { %v900_v37 = vpop.permute.xlu1 %899 }
 0x126   : > { %v902_v38 = vunpack.i.h.bf16 %v900_v37  ;;  %v901_v39 = vunpack.i.l.bf16 %v900_v37  ;;  %v895_v40 = vpop.permute.xlu0 %894 }
 0x127   : > { %v897_v43 = vunpack.i.h.bf16 %v895_v40  ;;  %v896_v44 = vunpack.i.l.bf16 %v895_v40 }
 0x128   : > { %v311_v47 = vsel %vm310_vm4, %v901_v39, %v902_v38  ;;  %v312_v48 = vsel %vm310_vm4, %v902_v38, %v901_v39 }
 0x129   : > { %v305_v51 = vsel %vm303_vm3, %v897_v43, %v896_v44  ;;  %v336_v52 = vpop.permute.xlu1 %335  ;;  %v304_v53 = vsel %vm303_vm3, %v896_v44, %v897_v43 }
 0x12a   : > { %v314_v56 = vsel %vm1247_vm5, %v312_v48, %v304_v53  ;;  %v316_v57 = vsel %vm1267_vm8, %v304_v53, %v312_v48  ;;  %v313_v61 = vsel %vm1263_vm7, %v311_v47, %v305_v51  ;;  %v315_v62 = vsel %vm1257_vm6, %v305_v51, %v311_v47  ;;  %v340_v8 = vpop.permute.xlu0 %339 }
 0x12b   : > { %v375_v59 = vsel %vm373_vm9, %v314_v56, %v352_v49  ;;  %v377_v60 = vsel %vm373_vm9, %v316_v57, %v358_v54  ;;  %v374_v3 = vsel %vm373_vm9, %v313_v61, %v351_v46  ;;  %v376_v5 = vsel %vm373_vm9, %v315_v62, %v357_v58 }
 0x12c   : > { %v815_v2 = vpack.c.bf16 %v377_v60, %v375_v59  ;;  %v817_v11 = vpack.c.bf16 %v376_v5, %v374_v3  ;;  %v337_v13 = vsel %vm303_vm3, %v334_v28, %v336_v52  ;;  %v338_v14 = vsel %vm303_vm3, %v336_v52, %v334_v28 }
 0x12d   : > { %v342_v10 = vpop.permute.xlu1 %341 }
 0x12e   : > { %v343_v15 = vsel %vm310_vm4, %v340_v8, %v342_v10  ;;  %v344_v17 = vsel %vm310_vm4, %v342_v10, %v340_v8  ;;  %816 = vmatprep.subr.bf16.mxu0 %v815_v2 }
 0x12f   : > { %v345_v9 = vsel %vm1263_vm7, %v343_v15, %v338_v14  ;;  %v346_v16 = vsel %vm1247_vm5, %v344_v17, %v337_v13  ;;  %818 = vmatpush1.bf16.msra.mxu0 %v817_v11  ;;  %v348_v24 = vsel %vm1267_vm8, %v337_v13, %v344_v17  ;;  %v347_v26 = vsel %vm1257_vm6, %v338_v14, %v343_v15  ;;  %v494_v11 = vld [vmem:[%s1507_s4] sm:$0xf] }
 0x130   : > { %v381_v19 = vsel %vm373_vm9, %v346_v16, %v370_v7  ;;  %v380_v21 = vsel %vm373_vm9, %v345_v9, %v369_v6 }
 0x131   : > { %v819_v22 = vpack.c.bf16 %v381_v19, %v379_v18  ;;  %v821_v23 = vpack.c.bf16 %v380_v21, %v378_v20 }
 0x133   : > { %820 = vmatprep.subr.bf16.mxu0 %v819_v22 }
 0x134   : > { %822 = vmatpush1.bf16.msra.mxu0 %v821_v23 }
 0x135   : > { %802 = vmatprep.subr.msk.mxu0 %vm373_vm9, %v348_v24 }
 0x138   : > { %803 = vmatpush1.msk.msra.mxu0 %vm373_vm9, %v347_v26 }
 0x139   : > { %804 = vmatmul.mubr.msk.f32.vlgmr.msra.gmra.mrb[0].mxu0 %vm387_vm10, %v277_v25 }
 0x13b   : > { %v385_v27 = vpop.permute.xlu0 %384 }
 0x20c   : > { %v463_v28 = vpop.f32.mrb[0].mxu0 }
 0x20d   : > { %v464_v30 = vadd.f32 %v463_v28, %v385_v27  ;;  %v465_v31 = vpop.f32.mrb[1].mxu0 }
 0x20e   : > { %v466_v32 = vadd.f32 %v465_v31, %v385_v27 }
 0x20f   : > { %v468_v34 = vsel %vm373_vm9, %v464_v30, 0.0  ;;  %v473_v37 = vmul.f32 %v464_v30, %v464_v30 }
 0x210   : > { %v469_v38 = vsel %vm373_vm9, %v466_v32, 0.0  ;;  %v474_v39 = vmul.f32 %v466_v32, %v466_v32 }
 0x211   : > { %v470_v40 = vadd.f32 %v469_v38, %v468_v34  ;;  %v475_v41 = vsel %vm373_vm9, %v473_v37, 0.0 }
 0x212   : > { %v476_v42 = vsel %vm373_vm9, %v474_v39, 0.0 }
 0x213   : > { %471 = vadd.xlane.f32.xlu1 %v470_v40  ;;  %v477_v43 = vadd.f32 %v476_v42, %v475_v41 }
 0x215   : > { %478 = vadd.xlane.f32.xlu0 %v477_v43 }
 0x2a0   : > { %v472_v44 = vpop.xlane.xlu1 %471 }
 0x2a1   : > { %v480_v45 = vmul.f32 0.00390625, %v472_v44 }
 0x2a2   : > { %v479_v46 = vpop.xlane.xlu0 %478 }
 0x2a3   : > { %v481_v47 = vmul.f32 0.00390625, %v479_v46  ;;  %v482_v48 = vmul.f32 %v480_v45, %v480_v45  ;;  %v485_v52 = vsub.f32 %v464_v30, %v480_v45  ;;  %v486_v53 = vsub.f32 %v466_v32, %v480_v45 }
 0x2a5   : > { %v483_v49 = vsub.f32 %v481_v47, %v482_v48 }
 0x2a7   : > { %v484_v50 = vmax.f32 %v483_v49, 0.0 }
 0x2a9   : > { %v487_v51 = vadd.f32 1e-05, %v484_v50 }
 0x2ab   : > { %925 = vrsqrt.f32 %v487_v51 }
 0x2b5   : > { %v926_v54 = vpop.eup %925 }
 0x2b6   : > { %v490_v55 = vmul.f32 %v926_v54, %v486_v53  ;;  %v489_v56 = vmul.f32 %v926_v54, %v485_v52 }
 0x2b8   : > { %v1335_v57 = vmax.f32 %v490_v55, 0.0  ;;  %v1337_v58 = vmax.f32 %v489_v56, 0.0 }
 0x2ba   : > { %497 = vrot.lane.b32.xlu0 %v1335_v57, %s1029_s14  ;;  %495 = vrot.lane.b32.xlu1 %v1337_v58, %s1029_s14  ;;  %v904_v59 = vpack.i.bf16 %v1335_v57, %v1337_v58 }
 0x2be   : > { %905 = vrot.lane.b32.xlu0 %v904_v59, %s1030_s29  ;;  %501 = vrot.lane.b32.xlu1 %v1337_v58, %s1028_s12 }
 0x2c2   : > { %503 = vrot.lane.b32.xlu1 %v1335_v57, %s1028_s12  ;;  %s723_s12 = sshll.u32 %s240_s15, 4  ;;  %s1461_s12 = int_to_ptr.vmem [resolvable:$true] %s723_s12 }
 0x2c3   : > { %s959_s26 = scalar_lea.vmem %s1461_s12, 128  ;;  %p966_p7 = scmp.lt.s32.totalorder %s1461_s12, %s964_s17 }
 0x2c4   : > { %p960_p6 = scmp.ne.s32.totalorder %s1461_s12, %s959_s26  ;;  %p967_p10 = scmp.lt.s32.totalorder %s965_s28, %s959_s26 }
 0x2c6   : > { %910 = vrot.lane.b32.xlu1 %v904_v59, %s1031_s16  ;;  %p961_p12 = pnand %p960_p6, %p1525_p11  ;;  %p968_p2 = por %p967_p10, %p966_p7 }
 0x2c8   : > { %p962_p13 = pneg %p961_p12 }
 0x2ca   : > { %p969_p4 = pnand %p968_p2, %p962_p13 }
 0x32c   : > { %v496_v60 = vpop.permute.xlu1 %495  ;;  %v498_v62 = vpop.permute.xlu0 %497 }
 0x32d   : > { %v500_v2 = vsel %vm273_vm1, %v498_v62, %v496_v60  ;;  %v499_v5 = vsel %vm273_vm1, %v496_v60, %v498_v62 }
 0x32e   : > { %v562_v37 = vrot.slane %v499_v5, 4 }
 0x330   : > { %v502_v61 = vpop.permute.xlu1 %501  ;;  %v906_v14 = vpop.permute.xlu0 %905 }
 0x331   : > { %v908_v17 = vunpack.i.h.bf16 %v906_v14  ;;  %v907_v9 = vunpack.i.l.bf16 %v906_v14 }
 0x333   : > { %v531_v20 = vsel %vm303_vm3, %v907_v9, %v908_v17  ;;  %v532_v22 = vsel %vm303_vm3, %v908_v17, %v907_v9 }
 0x334   : > { %v504_v63 = vpop.permute.xlu1 %503 }
 0x335   : > { %v1355_v3 = vsel %vm292_vm0, %v502_v61, %v504_v63  ;;  %v506_v8 = vsel %vm292_vm0, %v504_v63, %v502_v61 }
 0x336   : > { %v507_v6 = vsel %vm273_vm1, %v1355_v3, %v500_v2  ;;  %543 = vrot.lane.b32.xlu0 %v1355_v3, %s1030_s29  ;;  %v1370_v10 = vsel %vm276_vm2, %v499_v5, %v506_v8  ;;  %v579_v56 = vrot.slane %v1355_v3, 4 }
 0x337   : > { %v919_v7 = vpack.i.bf16 %v499_v5, %v507_v6  ;;  %v561_v38 = vrot.slane %v507_v6, 4  ;;  %v580_v59 = vrot.slane %v1370_v10, 4 }
 0x338   : > { %v911_v13 = vpop.permute.xlu1 %910 }
 0x339   : > { %920 = vrot.lane.b32.xlu1 %v919_v7, %s1031_s16  ;;  %v913_v15 = vunpack.i.h.bf16 %v911_v13  ;;  %v912_v12 = vunpack.i.l.bf16 %v911_v13 }
 0x33a   : > { %915 = vrot.lane.b32.xlu0 %v919_v7, %s1030_s29 }
 0x33b   : > { %v538_v18 = vsel %vm310_vm4, %v913_v15, %v912_v12  ;;  %v537_v19 = vsel %vm310_vm4, %v912_v12, %v913_v15 }
 0x33c   : > { %v540_v26 = vsel %vm1247_vm5, %v538_v18, %v531_v20  ;;  %v541_v27 = vsel %vm1257_vm6, %v532_v22, %v537_v19  ;;  %v539_v31 = vsel %vm1263_vm7, %v537_v19, %v532_v22  ;;  %v542_v39 = vsel %vm1267_vm8, %v531_v20, %v538_v18 }
 0x33d   : > { %545 = vrot.lane.b32.xlu1 %v1370_v10, %s1030_s29  ;;  %v568_v43 = vrot.slane %v540_v26, 4  ;;  %v573_v44 = vrot.slane %v541_v27, 4  ;;  %v567_v47 = vrot.slane %v539_v31, 4  ;;  %v574_v52 = vrot.slane %v542_v39, 4 }
 0x33e   : > { %549 = vrot.lane.b32.xlu0 %v1355_v3, %s1031_s16 }
 0x33f   : > { %v588_v8 = vsel %vm373_vm9, %v1335_v57, %v574_v52 }
 0x341   : > { %551 = vrot.lane.b32.xlu1 %v1370_v10, %s1031_s16  ;;  %s1459_s16 = scalar_lea.hbm %s1508_s5, %s814_s23 }
 0x342   : > { %593 = vperm.xlu0 %903, %v494_v11   ;;  %v587_v11 = vsel %vm373_vm9, %v1337_v58, %v573_v44 }
 0x3a8   : > { %v544_v16 = vpop.permute.xlu0 %543 }
 0x3ab   : > { %v921_v21 = vpop.permute.xlu1 %920 }
 0x3ac   : > { %v923_v23 = vunpack.i.h.bf16 %v921_v21  ;;  %v922_v24 = vunpack.i.l.bf16 %v921_v21  ;;  %v916_v25 = vpop.permute.xlu0 %915 }
 0x3ad   : > { %v918_v28 = vunpack.i.h.bf16 %v916_v25  ;;  %v917_v30 = vunpack.i.l.bf16 %v916_v25 }
 0x3ae   : > { %v521_v32 = vsel %vm310_vm4, %v922_v24, %v923_v23  ;;  %v522_v34 = vsel %vm310_vm4, %v923_v23, %v922_v24 }
 0x3af   : > { %v516_v40 = vsel %vm303_vm3, %v918_v28, %v917_v30  ;;  %v546_v41 = vpop.permute.xlu1 %545  ;;  %v515_v42 = vsel %vm303_vm3, %v917_v30, %v918_v28 }
 0x3b0   : > { %v524_v45 = vsel %vm1247_vm5, %v522_v34, %v515_v42  ;;  %v526_v46 = vsel %vm1267_vm8, %v515_v42, %v522_v34  ;;  %v523_v50 = vsel %vm1263_vm7, %v521_v32, %v516_v40  ;;  %v525_v51 = vsel %vm1257_vm6, %v516_v40, %v521_v32  ;;  %v550_v60 = vpop.permute.xlu0 %549 }
 0x3b1   : > { %v584_v48 = vsel %vm373_vm9, %v524_v45, %v562_v37  ;;  %v586_v49 = vsel %vm373_vm9, %v526_v46, %v568_v43  ;;  %v583_v54 = vsel %vm373_vm9, %v523_v50, %v561_v38  ;;  %v585_v55 = vsel %vm373_vm9, %v525_v51, %v567_v47 }
 0x3b2   : > { %v823_v53 = vpack.c.bf16 %v586_v49, %v584_v48  ;;  %v825_v62 = vpack.c.bf16 %v585_v55, %v583_v54  ;;  %v547_v63 = vsel %vm303_vm3, %v544_v16, %v546_v41  ;;  %v548_v2 = vsel %vm303_vm3, %v546_v41, %v544_v16 }
 0x3b3   : > { %v552_v61 = vpop.permute.xlu1 %551 }
 0x3b4   : > { %v553_v5 = vsel %vm310_vm4, %v550_v60, %v552_v61  ;;  %v554_v6 = vsel %vm310_vm4, %v552_v61, %v550_v60  ;;  %824 = vmatprep.subr.bf16.mxu1 %v823_v53 }
 0x3b5   : > { %v555_v3 = vsel %vm1263_vm7, %v553_v5, %v548_v2  ;;  %v556_v7 = vsel %vm1247_vm5, %v554_v6, %v547_v63  ;;  %826 = vmatpush1.bf16.msra.mxu1 %v825_v62  ;;  %v558_v35 = vsel %vm1267_vm8, %v547_v63, %v554_v6  ;;  %v557_v57 = vsel %vm1257_vm6, %v548_v2, %v553_v5 }
 0x3b6   : > { %v590_v10 = vsel %vm373_vm9, %v556_v7, %v580_v59  ;;  %v589_v13 = vsel %vm373_vm9, %v555_v3, %v579_v56 }
 0x3b7   : > { %v827_v4 = vpack.c.bf16 %v590_v10, %v588_v8  ;;  %v829_v14 = vpack.c.bf16 %v589_v13, %v587_v11 }
 0x3b9   : > { %828 = vmatprep.subr.bf16.mxu1 %v827_v4 }
 0x3ba   : > { %830 = vmatpush1.bf16.msra.mxu1 %v829_v14 }
 0x3bb   : > { %805 = vmatprep.subr.msk.mxu1 %vm373_vm9, %v558_v35 }
 0x3be   : > { %806 = vmatpush1.msk.msra.mxu1 %vm373_vm9, %v557_v57 }
 0x3bf   : > { %807 = vmatmul.mubr.msk.f32.vlgmr.msra.gmra.mrb[0].mxu1 %vm387_vm10, %v493_v29 }
 0x3c1   : > { %v594_v58 = vpop.permute.xlu0 %593 }
 0x492   : > { %v671_v15 = vpop.f32.mrb[0].mxu1 }
 0x493   : > { %v672_v12 = vadd.f32 %v671_v15, %v594_v58  ;;  %v673_v17 = vpop.f32.mrb[1].mxu1 }
 0x494   : > { %v674_v9 = vadd.f32 %v673_v17, %v594_v58 }
 0x495   : > { %v676_v36 = vsel %vm373_vm9, %v672_v12, 0.0  ;;  %v681_v16 = vmul.f32 %v672_v12, %v672_v12 }
 0x496   : > { %v677_v18 = vsel %vm373_vm9, %v674_v9, 0.0  ;;  %v682_v19 = vmul.f32 %v674_v9, %v674_v9 }
 0x497   : > { %v678_v20 = vadd.f32 %v677_v18, %v676_v36  ;;  %v683_v21 = vsel %vm373_vm9, %v681_v16, 0.0 }
 0x498   : > { %v684_v33 = vsel %vm373_vm9, %v682_v19, 0.0 }
 0x499   : > { %679 = vadd.xlane.f32.xlu1 %v678_v20  ;;  %v685_v22 = vadd.f32 %v684_v33, %v683_v21 }
 0x49b   : > { %686 = vadd.xlane.f32.xlu0 %v685_v22 }
 0x526   : > { %v680_v23 = vpop.xlane.xlu1 %679 }
 0x527   : > { %v688_v24 = vmul.f32 0.00390625, %v680_v23 }
 0x528   : > { %v687_v25 = vpop.xlane.xlu0 %686 }
 0x529   : > { %v689_v26 = vmul.f32 0.00390625, %v687_v25  ;;  %v690_v27 = vmul.f32 %v688_v24, %v688_v24  ;;  %v693_v32 = vsub.f32 %v672_v12, %v688_v24  ;;  %v694_v34 = vsub.f32 %v674_v9, %v688_v24 }
 0x52b   : > { %v691_v28 = vsub.f32 %v689_v26, %v690_v27 }
 0x52d   : > { %v692_v30 = vmax.f32 %v691_v28, 0.0 }
 0x52f   : > { %v695_v31 = vadd.f32 1e-05, %v692_v30 }
 0x531   : > { %927 = vrsqrt.f32 %v695_v31 }
 0x53b   : > { %v928_v37 = vpop.eup %927 }
 0x53c   : > { %v697_v38 = vmul.f32 %v928_v37, %v693_v32  ;;  %v698_v39 = vmul.f32 %v928_v37, %v694_v34 }
 0x53e   : > { %v699_v40 = vadd.f32 %v697_v38, %v1180_v0  ;;  %v700_v41 = vadd.f32 %v698_v39, %v1188_v1 }
 0x540   : > { %v701_v42 = vmax.f32 %v699_v40, 0.0  ;;  %v702_v43 = vmax.f32 %v700_v41, 0.0 }
 0x542   : > { %v705_v44 = vcombine.low %v701_v42, %v702_v43 }
 0x544   : > { %707 = vst [vmem:[%s240_s15] sm:$0xff] %v705_v44 }
 0x545   : > { %972 = shalt.err (!%p969_p4)
}
 0x546   : > { %s973_s13 = scalar_lea.hbm %s1459_s16, 128  ;;  %s977_s9 = scalar_lea.hbm %s1508_s5, 256 }
 0x547   : > { %p974_p5 = scmp.ne.s32.totalorder %s1459_s16, %s973_s13  ;;  %p978_p0 = scmp.lt.u32.totalorder %s1459_s16, %s1508_s5 }
 0x548   : > { %p979_p1 = scmp.lt.u32.totalorder %s977_s9, %s973_s13  ;;  %p981_p6 = scmp.lt.u32.totalorder %s973_s13, %s1459_s16 }
 0x549   : > { %p975_p8 = pnand %p974_p5, %p1525_p11 }
 0x54a   : > { %p980_p3 = por %p979_p1, %p978_p0 }
 0x54b   : > { %p976_p9 = pneg %p975_p8 }
 0x54c   : > { %p982_p12 = por %p981_p6, %p980_p3 }
 0x54e   : > { %p983_p13 = pnand %p982_p12, %p976_p9 }
 0x550   : > { %986 = shalt.err (!%p983_p13)
}
 0x551   : > { %833 = dma.vmem_to_hbm [thread:$0]  (%p1525_p11), %s1461_s12, 128, %s1459_s16, %s709_s25  }
 0x552 PF: > { %s735_s23 = sand.u32 1, %s1013_s18   ;;  %p1526_p7 = scmp.ne.s32.totalorder %s1513_s6, 0 }
 0x553   : > { %p1527_p10 = scmp.ge.s32.totalorder %s1025_s21, 2  ;;  %s736_s15 = scalar_lea.sflag [#allocation4], %s735_s23 }
 0x555   : > { %p840_p2 = pnand %p1527_p10, %p1526_p7 }
 0x557   : > { %1008 = dma.done.wait (!%p840_p2), %s736_s15, 128  }
 0x558   : > { %1010 = vsyncadd (!%p840_p2), %s736_s15, 4294967168  ;;  %p18_p4 = scmp.ge.s32.totalorder %s1090_s24, 4   ;;  %s1528_s18 = smov %s1017_s19 }
 0x559   : > { %s1529_s19 = smov %s1021_s20  ;;  %s1530_s20 = smov %s1102_s27 }
 0x55a   : > { %s1531_s21 = smov %s1090_s24  ;;  %20 = sbr.rel (!%p18_p4) target bundleno = 5 (0x5), region = 85 }
 0x561   :  { %741 = vsyncpa [#allocation3], 1 }
 0x562   :  { %743 = vsyncpa [#allocation3 + $0x1], 1 }
 0x563   :  { %744 = vsyncpa [#allocation4], 1 }
 0x564   :  { %746 = vsyncpa [#allocation4 + $0x1], 1 }

</bundles_post_ra>
